<compile_context>
chip_gen: v7x
topology: tpu7x:2x2x1
jax: 0.10.0
libtpu: 0.0.40
codegen_flags: <defaults>
</compile_context>

<pallas_src>
import functools

import jax
import jax.numpy as jnp
from jax import lax
from jax.experimental import pallas as pl
from jax.experimental.pallas import tpu as pltpu

LANES = 128                      # vreg lane width
SUBLANES = 8                     # f32 sublanes per vreg
CHUNK = SUBLANES * LANES         # 1024: alignment unit (one f32 (8,128) tile)
MAX_TM = 2048                    # rows per grid step: 2048*128*(4+4+1)B ~ 2.4 MB streamed/step
VMEM_LIMIT = 48 * 1024 * 1024    # explicit scoped-VMEM limit (v5e default is only 16 MiB);
                                 # well under v7x's 64 MiB physical VMEM per TensorCore


def _num_tensorcores() -> int:
    """Best-effort TensorCores-per-chip count (v7x -> 2, v5e/v6e -> 1); falls back to 1."""
    try:
        info = pltpu.get_tpu_info()
    except Exception:
        return 1
    for name in ("num_cores", "core_count", "num_tensorcores",
                 "tensorcore_count", "cores_per_chip", "num_cores_per_chip"):
        v = getattr(info, name, None)
        try:
            v = int(v)
        except (TypeError, ValueError):
            continue
        if v > 0:
            return v
    return 1


def _fold(x, tm):
    """(tm, LANES) f32 -> (SUBLANES, LANES) partial sums using only whole-vreg VPU adds.

    The reshape (tm,128)->(tm//8,8,128) matches the native (8,128) f32 tiling, so it is
    free; the axis-0 sum is vreg+vreg adds (no XLU, no masked partial stores).
    """
    return jnp.sum(x.reshape(tm // SUBLANES, SUBLANES, LANES), axis=0)


def _focal_kernel(pred_ref, tgt_ref, mask_ref, out_ref, *,
                  alpha, gamma, tm, rows, steps, split, edge_possible):
    """Elementwise focal terms + partial-sum reduction.

    out_ref (resident accumulator per core slab, shape (4, SUBLANES, LANES)):
      slab 0 = obj-loss partial sums      slab 2 = obj-mask counts
      slab 1 = noobj-loss partial sums    slab 3 = noobj-mask counts
    """
    if split:
        c = pl.program_id(0)              # core slab
        i = pl.program_id(1)              # reduction step within the slab
        b = c * steps + i                 # unclamped global block index
    else:
        i = pl.program_id(0)
        b = i

    @pl.when(i == 0)
    def _():
        out_ref[...] = jnp.zeros_like(out_ref)

    x = pred_ref[...].astype(jnp.float32)
    # sigmoid(x) == 0.5*tanh(0.5*x)+0.5 exactly -> one EUP pass instead of exp+recip.
    p = 0.5 * jnp.tanh(0.5 * x) + 0.5
    t = tgt_ref[...].astype(jnp.float32)

    # Packed masks: bit0 = obj, bit1 = noobj (values in {0,1,2,3}).
    mi = mask_ref[...].astype(jnp.int32)
    obj = jnp.bitwise_and(mi, 1).astype(jnp.float32)
    noobj = jnp.right_shift(mi, 1).astype(jnp.float32)

    # BCEWithLogitsLoss(reduction='none')(p, t) with p = sigmoid(pred) in [0, 1]:
    #   max(p, 0) = p and |p| = p  =>  bce = p*(1-t) + log(1 + exp(-p))   (2 EUP passes)
    bce = p * (1.0 - t) + jnp.log(1.0 + jnp.exp(-p))

    one_minus_p = 1.0 - p
    # gamma power: integer gamma lowers to (gamma-1) pure multiplies (no EUP pow)
    if float(gamma) == int(gamma) and 1 <= int(gamma) <= 8:
        pg = p
        qg = one_minus_p
        for _ in range(int(gamma) - 1):
            pg = pg * p
            qg = qg * one_minus_p
    elif float(gamma) == 0:
        pg = jnp.ones_like(p)
        qg = jnp.ones_like(p)
    else:
        pg = p ** gamma
        qg = one_minus_p ** gamma

    noobj_term = (1.0 - alpha) * pg * bce * noobj
    obj_term = alpha * qg * bce * obj

    def accumulate(ot, nt, om, nm):
        out_ref[0, :, :] += _fold(ot, tm)
        out_ref[1, :, :] += _fold(nt, tm)
        out_ref[2, :, :] += _fold(om, tm)
        out_ref[3, :, :] += _fold(nm, tm)

    if edge_possible:
        # Only the partial last block / surplus core step needs masking; gate the
        # iota + compares + selects behind pl.when so full blocks skip it entirely.
        is_edge = (b + 1) * tm > rows

        @pl.when(jnp.logical_not(is_edge))
        def _():
            accumulate(obj_term, noobj_term, obj, noobj)

        @pl.when(is_edge)
        def _():
            # Rows past `rows` (partial last block garbage / surplus core step) must
            # contribute nothing; jnp.where also squashes any NaN/Inf from garbage data.
            rid = b * tm + lax.broadcasted_iota(jnp.int32, (tm, LANES), 0)
            valid = rid < rows
            zero = jnp.zeros_like(p)
            accumulate(jnp.where(valid, obj_term, zero),
                       jnp.where(valid, noobj_term, zero),
                       jnp.where(valid, obj, zero),
                       jnp.where(valid, noobj, zero))
    else:
        accumulate(obj_term, noobj_term, obj, noobj)


def focal_loss_lg(pred, target, obj_mask, noobj_mask, *,
                  alpha=0.25, gamma=2, reduction="mean"):
    """JAX wrapper matching FocalLoss_lg(alpha, gamma, add_logist=True).forward."""
    n = pred.size
    assert n > 0, "empty input"
    # Alignment: when n % 1024 == 0 there is NO pad copy (reshape only).  Otherwise
    # zero-pad <= 1023 elements in the ORIGINAL dtypes; padded mask bits are 0 so the
    # extra elements contribute nothing to sums or counts.
    pad_elems = (-n) % CHUNK
    rows = (n + pad_elems) // LANES            # always a multiple of 8

    def float_dtype(x):
        return x.dtype if x.dtype in (jnp.float32, jnp.bfloat16, jnp.float16) else jnp.float32

    def prep(x, dtype):
        x = jnp.asarray(x, dtype).reshape(-1)
        if pad_elems:
            x = jnp.pad(x, (0, pad_elems))
        return x.reshape(rows, LANES)

    p2 = prep(pred, float_dtype(pred))         # native float dtype (bf16 stays bf16)
    t2 = prep(target, float_dtype(target))
    # Bit-pack both masks into ONE int8 stream: bit0 = obj, bit1 = noobj.
    m_packed = jnp.asarray(obj_mask, jnp.int8) | (jnp.asarray(noobj_mask, jnp.int8) << 1)
    m2 = prep(m_packed, jnp.int8)

    tm = rows if rows <= MAX_TM else MAX_TM    # tm % 8 == 0 always
    nb = pl.cdiv(rows, tm)                     # number of (tm, LANES) blocks

    # Split the stream across TensorCores only if the chip actually has >1 (v7x) and
    # there is more than one block; on single-TC v5e/v6e the grid stays 1-D.
    ncores = _num_tensorcores()
    if ncores > 1 and nb > 1:
        split = True
        ncores_used = min(ncores, nb)
        steps = pl.cdiv(nb, ncores_used)
    else:
        split = False
        ncores_used = 1
        steps = nb
    edge_possible = (ncores_used * steps * tm) != rows   # partial last block / surplus step?

    kernel = functools.partial(
        _focal_kernel, alpha=float(alpha), gamma=gamma, tm=tm,
        rows=rows, steps=steps, split=split, edge_possible=edge_possible)

    if split:
        # Clamp surplus steps to the last real block; the in-kernel edge mask (based on
        # the UNclamped index) zeroes their contribution, so nothing is double counted.
        in_map = lambda c, i: (jnp.minimum(c * steps + i, nb - 1), 0)
        out_map = lambda c, i: (c, 0, 0, 0)
        grid = (ncores_used, steps)
        # TODO(synk): on v7x verify plain "parallel" shards axis 0 across both
        # TensorCores; if not, switch axis 0 to pltpu.CORE_PARALLEL.
        dims = ("parallel", "arbitrary")
    else:
        in_map = lambda i: (i, 0)
        out_map = lambda i: (0, 0, 0, 0)
        grid = (steps,)
        dims = ("arbitrary",)

    partials = pl.pallas_call(
        kernel,
        out_shape=jax.ShapeDtypeStruct((ncores_used, 4, SUBLANES, LANES), jnp.float32),
        grid_spec=pltpu.PrefetchScalarGridSpec(
            num_scalar_prefetch=0,
            grid=grid,
            in_specs=[
                pl.BlockSpec((tm, LANES), in_map),     # pred (float)
                pl.BlockSpec((tm, LANES), in_map),     # target (float)
                pl.BlockSpec((tm, LANES), in_map),     # packed masks (int8)
            ],
            out_specs=pl.BlockSpec((None, 4, SUBLANES, LANES), out_map),
        ),
        compiler_params=pltpu.CompilerParams(
            dimension_semantics=dims,
            vmem_limit_bytes=VMEM_LIMIT),
    )(p2, t2, m2)

    sums = jnp.sum(partials, axis=(0, 2, 3))      # tiny final cross-lane reduce (glue)
    obj_sum, noobj_sum, obj_cnt, noobj_cnt = sums[0], sums[1], sums[2], sums[3]

    if reduction == "sum":
        obj_loss = jnp.where(obj_cnt > 0, obj_sum, 0.0)
        noobj_loss = noobj_sum
    else:  # 'mean' (default)
        obj_loss = jnp.where(obj_cnt > 0, obj_sum / jnp.maximum(obj_cnt, 1.0), 0.0)
        # NaN if noobj_mask is empty -- matches torch mean-of-empty behavior.
        noobj_loss = noobj_sum / noobj_cnt
    all_loss = obj_loss + noobj_loss
    return all_loss, obj_loss, noobj_loss


def _reference(pred, target, obj_mask, noobj_mask, alpha=0.25, gamma=2, reduction="mean"):
    """Pure-JAX reference mirroring the PyTorch module."""
    p = jax.nn.sigmoid(pred.astype(jnp.float32))
    t = target.astype(jnp.float32)
    bce = jnp.maximum(p, 0.0) - p * t + jnp.log1p(jnp.exp(-jnp.abs(p)))
    noobj_vals = (1.0 - alpha) * p ** gamma * bce
    obj_vals = alpha * (1.0 - p) ** gamma * bce
    om = obj_mask.astype(bool)
    nm = noobj_mask.astype(bool)
    obj_cnt = jnp.sum(om)
    noobj_cnt = jnp.sum(nm)
    obj_sum = jnp.sum(jnp.where(om, obj_vals, 0.0))
    noobj_sum = jnp.sum(jnp.where(nm, noobj_vals, 0.0))
    if reduction == "sum":
        obj_loss = jnp.where(obj_cnt > 0, obj_sum, 0.0)
        noobj_loss = noobj_sum
    else:
        obj_loss = jnp.where(obj_cnt > 0, obj_sum / jnp.maximum(obj_cnt, 1), 0.0)
        noobj_loss = noobj_sum / noobj_cnt
    return obj_loss + noobj_loss, obj_loss, noobj_loss


if __name__ == "__main__":
    def make_inputs(key, shape):
        k1, k2, k3 = jax.random.split(key, 3)
        pred = jax.random.normal(k1, shape, dtype=jnp.float32)
        target = (jax.random.uniform(k2, shape) > 0.5).astype(jnp.float32)
        obj_mask = jax.random.uniform(k3, shape) < 0.2
        noobj_mask = jnp.logical_not(obj_mask)
        return pred, target, obj_mask, noobj_mask

    base_key = jax.random.PRNGKey(0)
    # YOLO-like prediction maps (NCHW):
    #   (2,4,16,16)  -> 1024-aligned, single block, no pad (copy-free path)
    #   (3,5,7,11)   -> unaligned, exercises the pad path
    #   (4,20,64,64) -> multi-block with a partial last block (edge-mask path)
    for case_idx, shape in enumerate([(2, 4, 16, 16), (3, 5, 7, 11), (4, 20, 64, 64)]):
        inputs = make_inputs(jax.random.fold_in(base_key, case_idx), shape)
        for reduction in ("mean", "sum"):
            got = focal_loss_lg(*inputs, alpha=0.25, gamma=2, reduction=reduction)
            jax.block_until_ready(got)
            want = _reference(*inputs, alpha=0.25, gamma=2, reduction=reduction)
            for g, w in zip(got, want):
                assert jnp.allclose(g, w, rtol=1e-4, atol=1e-6), (shape, reduction, g, w)

    print("KERNEL_OK")
</pallas_src>

<mosaic_0001>
module attributes {stable_mosaic.version = 11 : i64} {
  func.func @_focal_kernel(%arg0: i32, %arg1: memref<16x128xf32, #tpu.memory_space<vmem>>, %arg2: memref<16x128xf32, #tpu.memory_space<vmem>>, %arg3: memref<16x128xi8, #tpu.memory_space<vmem>>, %arg4: memref<1x4x8x128xf32, #tpu.memory_space<vmem>>) attributes {dimension_semantics = [#tpu.dimension_semantics<arbitrary>], iteration_bounds = array<i64: 1>, scalar_prefetch = 0 : i64, scratch_operands = 0 : i64, tpu.core_type = #tpu.core_type<tc>, window_params = [{transform_indices = @transform_0, window_bounds = array<i64: 16, 128>}, {transform_indices = @transform_1, window_bounds = array<i64: 16, 128>}, {transform_indices = @transform_2, window_bounds = array<i64: 16, 128>}, {pipeline_mode = #tpu.pipeline_mode<synchronous>, transform_indices = @transform_3, window_bounds = array<i64: 1, 4, 8, 128>}]} {
    %c0_i32 = arith.constant 0 : i32
    %0 = arith.cmpi eq, %arg0, %c0_i32 : i32
    %1 = arith.extui %0 : i1 to i32
    %c0_i32_0 = arith.constant 0 : i32
    %2 = arith.cmpi ne, %1, %c0_i32_0 : i32
    scf.if %2 {
      %cst_48 = arith.constant 0.000000e+00 : f32
      %74 = vector.broadcast %cst_48 : f32 to vector<4x8x128xf32>
      %c0_49 = arith.constant 0 : index
      %c0_50 = arith.constant 0 : index
      %c0_51 = arith.constant 0 : index
      %c0_52 = arith.constant 0 : index
      %75 = vector.load %arg4[%c0_49, %c0_50, %c0_51, %c0_52] : memref<1x4x8x128xf32, #tpu.memory_space<vmem>>, vector<1x4x8x128xf32>
      %76 = vector.shape_cast %75 : vector<1x4x8x128xf32> to vector<4x8x128xf32>
      %77 = vector.shape_cast %74 : vector<4x8x128xf32> to vector<1x4x8x128xf32>
      tpu.vector_store %arg4[%c0_49, %c0_50, %c0_51, %c0_52], %77 {strides = array<i32>} : memref<1x4x8x128xf32, #tpu.memory_space<vmem>>, vector<1x4x8x128xf32>,
    } else {
    }
    %c0 = arith.constant 0 : index
    %c0_1 = arith.constant 0 : index
    %3 = vector.load %arg1[%c0, %c0_1] : memref<16x128xf32, #tpu.memory_space<vmem>>, vector<16x128xf32>
    %cst = arith.constant 5.000000e-01 : f32
    %4 = vector.broadcast %cst : f32 to vector<16x128xf32>
    %5 = arith.mulf %4, %3 : vector<16x128xf32>
    %6 = math.tanh %5 : vector<16x128xf32>
    %cst_2 = arith.constant 5.000000e-01 : f32
    %7 = vector.broadcast %cst_2 : f32 to vector<16x128xf32>
    %8 = arith.mulf %7, %6 : vector<16x128xf32>
    %cst_3 = arith.constant 5.000000e-01 : f32
    %9 = vector.broadcast %cst_3 : f32 to vector<16x128xf32>
    %10 = arith.addf %8, %9 : vector<16x128xf32>
    %c0_4 = arith.constant 0 : index
    %c0_5 = arith.constant 0 : index
    %11 = vector.load %arg2[%c0_4, %c0_5] : memref<16x128xf32, #tpu.memory_space<vmem>>, vector<16x128xf32>
    %c0_6 = arith.constant 0 : index
    %c0_7 = arith.constant 0 : index
    %12 = vector.load %arg3[%c0_6, %c0_7] : memref<16x128xi8, #tpu.memory_space<vmem>>, vector<16x128xi8>
    %13 = arith.extsi %12 : vector<16x128xi8> to vector<16x128xi32>
    %c1_i32 = arith.constant 1 : i32
    %14 = vector.broadcast %c1_i32 : i32 to vector<16x128xi32>
    %15 = arith.andi %13, %14 : vector<16x128xi32>
    %16 = arith.sitofp %15 : vector<16x128xi32> to vector<16x128xf32>
    %c1_i32_8 = arith.constant 1 : i32
    %17 = vector.broadcast %c1_i32_8 : i32 to vector<16x128xi32>
    %18 = arith.shrsi %13, %17 : vector<16x128xi32>
    %19 = arith.sitofp %18 : vector<16x128xi32> to vector<16x128xf32>
    %cst_9 = arith.constant 1.000000e+00 : f32
    %20 = vector.broadcast %cst_9 : f32 to vector<16x128xf32>
    %21 = arith.subf %20, %11 : vector<16x128xf32>
    %22 = arith.mulf %10, %21 : vector<16x128xf32>
    %cst_10 = arith.constant 0.000000e+00 : f32
    %23 = vector.broadcast %cst_10 : f32 to vector<16x128xf32>
    %24 = arith.subf %23, %10 : vector<16x128xf32>
    %25 = math.exp %24 : vector<16x128xf32>
    %cst_11 = arith.constant 1.000000e+00 : f32
    %26 = vector.broadcast %cst_11 : f32 to vector<16x128xf32>
    %27 = arith.addf %26, %25 : vector<16x128xf32>
    %28 = math.log %27 : vector<16x128xf32>
    %29 = arith.addf %22, %28 : vector<16x128xf32>
    %cst_12 = arith.constant 1.000000e+00 : f32
    %30 = vector.broadcast %cst_12 : f32 to vector<16x128xf32>
    %31 = arith.subf %30, %10 : vector<16x128xf32>
    %32 = arith.mulf %10, %10 : vector<16x128xf32>
    %33 = arith.mulf %31, %31 : vector<16x128xf32>
    %cst_13 = arith.constant 7.500000e-01 : f32
    %34 = vector.broadcast %cst_13 : f32 to vector<16x128xf32>
    %35 = arith.mulf %34, %32 : vector<16x128xf32>
    %36 = arith.mulf %35, %29 : vector<16x128xf32>
    %37 = arith.mulf %36, %19 : vector<16x128xf32>
    %cst_14 = arith.constant 2.500000e-01 : f32
    %38 = vector.broadcast %cst_14 : f32 to vector<16x128xf32>
    %39 = arith.mulf %38, %33 : vector<16x128xf32>
    %40 = arith.mulf %39, %29 : vector<16x128xf32>
    %41 = arith.mulf %40, %16 : vector<16x128xf32>
    %c0_15 = arith.constant 0 : index
    %c0_16 = arith.constant 0 : index
    %c0_17 = arith.constant 0 : index
    %c0_18 = arith.constant 0 : index
    %42 = vector.load %arg4[%c0_15, %c0_16, %c0_17, %c0_18] : memref<1x4x8x128xf32, #tpu.memory_space<vmem>>, vector<1x1x8x128xf32>
    %43 = vector.shape_cast %42 : vector<1x1x8x128xf32> to vector<8x128xf32>
    %44 = vector.shape_cast %41 : vector<16x128xf32> to vector<2x8x128xf32>
    %cst_19 = arith.constant dense<0.000000e+00> : vector<8x128xf32>
    %45 = vector.multi_reduction <add>, %44, %cst_19 [0] : vector<2x8x128xf32> to vector<8x128xf32>
    %46 = arith.addf %43, %45 : vector<8x128xf32>
    %c0_20 = arith.constant 0 : index
    %c0_21 = arith.constant 0 : index
    %c0_22 = arith.constant 0 : index
    %c0_23 = arith.constant 0 : index
    %47 = vector.load %arg4[%c0_20, %c0_21, %c0_22, %c0_23] : memref<1x4x8x128xf32, #tpu.memory_space<vmem>>, vector<1x1x8x128xf32>
    %48 = vector.shape_cast %47 : vector<1x1x8x128xf32> to vector<8x128xf32>
    %49 = vector.shape_cast %46 : vector<8x128xf32> to vector<1x1x8x128xf32>
    tpu.vector_store %arg4[%c0_20, %c0_21, %c0_22, %c0_23], %49 {strides = array<i32>} : memref<1x4x8x128xf32, #tpu.memory_space<vmem>>, vector<1x1x8x128xf32>,
    %c0_24 = arith.constant 0 : index
    %c1 = arith.constant 1 : index
    %c0_25 = arith.constant 0 : index
    %c0_26 = arith.constant 0 : index
    %50 = vector.load %arg4[%c0_24, %c1, %c0_25, %c0_26] : memref<1x4x8x128xf32, #tpu.memory_space<vmem>>, vector<1x1x8x128xf32>
    %51 = vector.shape_cast %50 : vector<1x1x8x128xf32> to vector<8x128xf32>
    %52 = vector.shape_cast %37 : vector<16x128xf32> to vector<2x8x128xf32>
    %cst_27 = arith.constant dense<0.000000e+00> : vector<8x128xf32>
    %53 = vector.multi_reduction <add>, %52, %cst_27 [0] : vector<2x8x128xf32> to vector<8x128xf32>
    %54 = arith.addf %51, %53 : vector<8x128xf32>
    %c0_28 = arith.constant 0 : index
    %c1_29 = arith.constant 1 : index
    %c0_30 = arith.constant 0 : index
    %c0_31 = arith.constant 0 : index
    %55 = vector.load %arg4[%c0_28, %c1_29, %c0_30, %c0_31] : memref<1x4x8x128xf32, #tpu.memory_space<vmem>>, vector<1x1x8x128xf32>
    %56 = vector.shape_cast %55 : vector<1x1x8x128xf32> to vector<8x128xf32>
    %57 = vector.shape_cast %54 : vector<8x128xf32> to vector<1x1x8x128xf32>
    tpu.vector_store %arg4[%c0_28, %c1_29, %c0_30, %c0_31], %57 {strides = array<i32>} : memref<1x4x8x128xf32, #tpu.memory_space<vmem>>, vector<1x1x8x128xf32>,
    %c0_32 = arith.constant 0 : index
    %c2 = arith.constant 2 : index
    %c0_33 = arith.constant 0 : index
    %c0_34 = arith.constant 0 : index
    %58 = vector.load %arg4[%c0_32, %c2, %c0_33, %c0_34] : memref<1x4x8x128xf32, #tpu.memory_space<vmem>>, vector<1x1x8x128xf32>
    %59 = vector.shape_cast %58 : vector<1x1x8x128xf32> to vector<8x128xf32>
    %60 = vector.shape_cast %16 : vector<16x128xf32> to vector<2x8x128xf32>
    %cst_35 = arith.constant dense<0.000000e+00> : vector<8x128xf32>
    %61 = vector.multi_reduction <add>, %60, %cst_35 [0] : vector<2x8x128xf32> to vector<8x128xf32>
    %62 = arith.addf %59, %61 : vector<8x128xf32>
    %c0_36 = arith.constant 0 : index
    %c2_37 = arith.constant 2 : index
    %c0_38 = arith.constant 0 : index
    %c0_39 = arith.constant 0 : index
    %63 = vector.load %arg4[%c0_36, %c2_37, %c0_38, %c0_39] : memref<1x4x8x128xf32, #tpu.memory_space<vmem>>, vector<1x1x8x128xf32>
    %64 = vector.shape_cast %63 : vector<1x1x8x128xf32> to vector<8x128xf32>
    %65 = vector.shape_cast %62 : vector<8x128xf32> to vector<1x1x8x128xf32>
    tpu.vector_store %arg4[%c0_36, %c2_37, %c0_38, %c0_39], %65 {strides = array<i32>} : memref<1x4x8x128xf32, #tpu.memory_space<vmem>>, vector<1x1x8x128xf32>,
    %c0_40 = arith.constant 0 : index
    %c3 = arith.constant 3 : index
    %c0_41 = arith.constant 0 : index
    %c0_42 = arith.constant 0 : index
    %66 = vector.load %arg4[%c0_40, %c3, %c0_41, %c0_42] : memref<1x4x8x128xf32, #tpu.memory_space<vmem>>, vector<1x1x8x128xf32>
    %67 = vector.shape_cast %66 : vector<1x1x8x128xf32> to vector<8x128xf32>
    %68 = vector.shape_cast %19 : vector<16x128xf32> to vector<2x8x128xf32>
    %cst_43 = arith.constant dense<0.000000e+00> : vector<8x128xf32>
    %69 = vector.multi_reduction <add>, %68, %cst_43 [0] : vector<2x8x128xf32> to vector<8x128xf32>
    %70 = arith.addf %67, %69 : vector<8x128xf32>
    %c0_44 = arith.constant 0 : index
    %c3_45 = arith.constant 3 : index
    %c0_46 = arith.constant 0 : index
    %c0_47 = arith.constant 0 : index
    %71 = vector.load %arg4[%c0_44, %c3_45, %c0_46, %c0_47] : memref<1x4x8x128xf32, #tpu.memory_space<vmem>>, vector<1x1x8x128xf32>
    %72 = vector.shape_cast %71 : vector<1x1x8x128xf32> to vector<8x128xf32>
    %73 = vector.shape_cast %70 : vector<8x128xf32> to vector<1x1x8x128xf32>
    tpu.vector_store %arg4[%c0_44, %c3_45, %c0_46, %c0_47], %73 {strides = array<i32>} : memref<1x4x8x128xf32, #tpu.memory_space<vmem>>, vector<1x1x8x128xf32>,
    return
  }
  func.func @transform_0(%arg0: i32) -> (i32, i32) {
    %c0_i32 = arith.constant 0 : i32
    %c0_i32_0 = arith.constant 0 : i32
    return %arg0, %c0_i32 : i32, i32
  }
  func.func @transform_1(%arg0: i32) -> (i32, i32) {
    %c0_i32 = arith.constant 0 : i32
    %c0_i32_0 = arith.constant 0 : i32
    return %arg0, %c0_i32 : i32, i32
  }
  func.func @transform_2(%arg0: i32) -> (i32, i32) {
    %c0_i32 = arith.constant 0 : i32
    %c0_i32_0 = arith.constant 0 : i32
    return %arg0, %c0_i32 : i32, i32
  }
  func.func @transform_3(%arg0: i32) -> (i32, i32, i32, i32) {
    %c0_i32 = arith.constant 0 : i32
    %c0_i32_0 = arith.constant 0 : i32
    %c0_i32_1 = arith.constant 0 : i32
    %c0_i32_2 = arith.constant 0 : i32
    %c0_i32_3 = arith.constant 0 : i32
    return %c0_i32, %c0_i32_0, %c0_i32_1, %c0_i32_2 : i32, i32, i32, i32
  }
}

</mosaic_0001>

<bundles_post_ra>
// kernel: tpu_custom_call.1
= control target key start
LH: loop header
LB: loop body
LE: loop exit
PB: predicated region body
PF: predicated region fallthrough
CT: control target
= control target key end

     0   :  { %8 = vsyncpa [#allocation3], 0  ;;  %s315_s0 = inlined_call_operand.hbm [shape: f32[16,128], index: 0, kind: input, shape index: {}]   ;;  %s316_s1 = inlined_call_operand.hbm [shape: f32[16,128], index: 1, kind: input, shape index: {}]   ;;  %s317_s2 = inlined_call_operand.vmem [shape: s8[16,128], index: 2, kind: input, shape index: {}]   ;;  %s318_s3 = inlined_call_operand.hbm [shape: f32[1,4,8,128], index: 3, kind: output, shape index: {}]  }
   0x1   :  { %9 = vsyncpa [#allocation6], 0 }
   0x2   :  { %10 = vsyncpa [#allocation4], 0  ;;  %s242_s12 = smov [#allocation2]   ;;  %s170_s16 = scalar_lea.hbm %s315_s0, 256 }
   0x3   :  { %s16_s13 = sshll.u32 %s242_s12, 4  ;;  %p171_p0 = scmp.ne.s32.totalorder %s315_s0, %s170_s16  ;;  %s17_s13 = int_to_ptr.vmem [resolvable:$true] %s16_s13 }
   0x4   :  { %p174_p1 = scmp.lt.u32.totalorder %s170_s16, %s315_s0 }
   0x6   :  { %p176_p2 = pnand %p174_p1, %p171_p0 }
   0x8   :  { %179 = shalt.err (!%p176_p2)
}
   0x9   :  { %s180_s21 = scalar_lea.vmem %s17_s13, 256  ;;  %p185_p4 = scmp.lt.s32.totalorder %s17_s13, %s17_s13 }
   0xa   :  { %p181_p3 = scmp.ne.s32.totalorder %s17_s13, %s180_s21  ;;  %p186_p5 = scmp.lt.s32.totalorder %s180_s21, %s180_s21 }
   0xc   :  { %p187_p6 = por %p186_p5, %p185_p4 }
   0xe   :  { %p188_p7 = pnand %p187_p6, %p181_p3 }
  0x10   :  { %191 = shalt.err (!%p188_p7)
}
  0x11   :  { %s243_s22 = smov 128   ;;  %s244_s23 = smov 8  }
  0x12   :  { %22 = dma.hbm_to_vmem [thread:$0]  %s315_s0, 256, %s17_s13, [#allocation3], %s243_s22, %s243_s22, %s244_s23  }
  0x13   :  { %s245_s26 = smov [#allocation5]   ;;  %s192_s30 = scalar_lea.hbm %s316_s1, 256 }
  0x14   :  { %s28_s27 = sshll.u32 %s245_s26, 4  ;;  %p193_p8 = scmp.ne.s32.totalorder %s316_s1, %s192_s30  ;;  %s29_s27 = int_to_ptr.vmem [resolvable:$true] %s28_s27 }
  0x15   :  { %p196_p9 = scmp.lt.u32.totalorder %s192_s30, %s316_s1 }
  0x17   :  { %p198_p10 = pnand %p196_p9, %p193_p8 }
  0x19   :  { %201 = shalt.err (!%p198_p10)
}
  0x1a   :  { %s202_s8 = scalar_lea.vmem %s29_s27, 256  ;;  %p207_p12 = scmp.lt.s32.totalorder %s29_s27, %s29_s27 }
  0x1b   :  { %p203_p11 = scmp.ne.s32.totalorder %s29_s27, %s202_s8  ;;  %p208_p13 = scmp.lt.s32.totalorder %s202_s8, %s202_s8 }
  0x1d   :  { %p209_p0 = por %p208_p13, %p207_p12 }
  0x1f   :  { %p210_p1 = pnand %p209_p0, %p203_p11 }
  0x21   :  { %213 = shalt.err (!%p210_p1)
}
  0x22   :  { %34 = dma.hbm_to_vmem [thread:$0]  %s316_s1, 256, %s29_s27, [#allocation6], %s243_s22, %s243_s22, %s244_s23  }
  0x23   :  { %236 = dma.done.wait [#allocation3], 256  }
  0x24   :  { %237 = vsyncadd [#allocation3], 4294967040 }
  0x25   :  { %238 = dma.done.wait [#allocation6], 256  }
  0x26   :  { %239 = vsyncadd [#allocation6], 4294967040  ;;  %v51_v0 = vld [vmem:[#allocation2] sm:$0xff]  ;;  %v52_v1 = vld [vmem:[#allocation2 + $0x8] sm:$0xff]  ;;  %s246_s1 = smov [#allocation7]  }
  0x27   :  { %v53_v2 = vmul.f32 0.5, %v51_v0  ;;  %v54_v3 = vmul.f32 0.5, %v52_v1  ;;  %v149_v4 = vld [vmem:[%s317_s2] sm:$0xf]   ;;  %v61_v31 = vld [vmem:[#allocation5] sm:$0xff]  ;;  %v62_v32 = vld [vmem:[#allocation5 + $0x8] sm:$0xff] }
  0x28   :  { %v150_v5 = vunpack.c.0.s8 %v149_v4  ;;  %v151_v6 = vunpack.c.1.s8 %v149_v4  ;;  %v75_v35 = vsub.f32 1.0, %v61_v31  ;;  %v76_v36 = vsub.f32 1.0, %v62_v32  ;;  %s135_s2 = sshll.u32 %s246_s1, 4  ;;  %s136_s2 = int_to_ptr.vmem [resolvable:$true] %s135_s2 }
  0x29   :  { %158 = vtanh.f32 %v53_v2  ;;  %s214_s12 = scalar_lea.vmem %s136_s2, 512  ;;  %p219_p3 = scmp.lt.s32.totalorder %s136_s2, %s136_s2 }
  0x2a   :  { %160 = vtanh.f32 %v54_v3  ;;  %v67_v7 = vand.u32 1, %v150_v5  ;;  %v68_v8 = vand.u32 1, %v151_v6  ;;  %v71_v9 = vshra.s32 %v150_v5, 1  ;;  %p215_p2 = scmp.ne.s32.totalorder %s136_s2, %s214_s12  ;;  %p220_p4 = scmp.lt.s32.totalorder %s214_s12, %s214_s12 }
  0x2b   :  { %v72_v10 = vshra.s32 %v151_v6, 1 }
  0x2c   :  { %v69_v11 = vcvt.s32.f32 %v67_v7  ;;  %v70_v12 = vcvt.s32.f32 %v68_v8  ;;  %v73_v13 = vcvt.s32.f32 %v71_v9  ;;  %p221_p5 = por %p220_p4, %p219_p3 }
  0x2d   :  { %v74_v14 = vcvt.s32.f32 %v72_v10 }
  0x2e   :  { %v122_v15 = vadd.f32 %v70_v12, %v69_v11  ;;  %p222_p6 = pnand %p221_p5, %p215_p2 }
  0x2f   :  { %v127_v16 = vadd.f32 %v74_v14, %v73_v13 }
  0x30   :  { %124 = vst [vmem:[#allocation7 + $0x10] sm:$0xff] %v122_v15 }
  0x31   :  { %129 = vst [vmem:[#allocation7 + $0x18] sm:$0xff] %v127_v16 }
  0x33   :  { %v159_v17 = vpop.eup %158 }
  0x34   :  { %v161_v18 = vpop.eup %160  ;;  %v57_v19 = vmul.f32 0.5, %v159_v17 }
  0x35   :  { %v58_v20 = vmul.f32 0.5, %v161_v18 }
  0x36   :  { %v59_v21 = vadd.f32 0.5, %v57_v19 }
  0x37   :  { %v60_v22 = vadd.f32 0.5, %v58_v20 }
  0x38   :  { %v79_v23 = vsub.f32 0.0, %v59_v21  ;;  %v93_v33 = vsub.f32 1.0, %v59_v21  ;;  %v95_v38 = vmul.f32 %v59_v21, %v59_v21  ;;  %v77_v41 = vmul.f32 %v75_v35, %v59_v21 }
  0x39   :  { %v80_v24 = vsub.f32 0.0, %v60_v22  ;;  %v94_v34 = vsub.f32 1.0, %v60_v22  ;;  %v96_v40 = vmul.f32 %v60_v22, %v60_v22  ;;  %v78_v43 = vmul.f32 %v76_v36, %v60_v22 }
  0x3a   :  { %v81_v25 = vmul.f32 1.442695, %v79_v23  ;;  %v97_v37 = vmul.f32 %v93_v33, %v93_v33  ;;  %v99_v47 = vmul.f32 0.75, %v95_v38 }
  0x3b   :  { %v83_v26 = vmul.f32 1.442695, %v80_v24  ;;  %v98_v39 = vmul.f32 %v94_v34, %v94_v34  ;;  %v100_v50 = vmul.f32 0.75, %v96_v40 }
  0x3c   :  { %162 = vpow2.f32 %v81_v25  ;;  %v105_v46 = vmul.f32 0.25, %v97_v37 }
  0x3d   :  { %164 = vpow2.f32 %v83_v26  ;;  %v106_v49 = vmul.f32 0.25, %v98_v39 }
  0x46   :  { %v163_v27 = vpop.eup %162 }
  0x47   :  { %v165_v28 = vpop.eup %164  ;;  %v85_v29 = vadd.f32 1.0, %v163_v27 }
  0x48   :  { %v86_v30 = vadd.f32 1.0, %v165_v28 }
  0x49   :  { %166 = vlog2.f32 %v85_v29 }
  0x4a   :  { %168 = vlog2.f32 %v86_v30 }
  0x53   :  { %v167_v42 = vpop.eup %166 }
  0x54   :  { %v169_v44 = vpop.eup %168  ;;  %v88_v45 = vmul.f32 0.6931472, %v167_v42 }
  0x55   :  { %v90_v48 = vmul.f32 0.6931472, %v169_v44 }
  0x56   :  { %v91_v51 = vadd.f32 %v88_v45, %v77_v41 }
  0x57   :  { %v92_v52 = vadd.f32 %v90_v48, %v78_v43 }
  0x58   :  { %v107_v53 = vmul.f32 %v105_v46, %v91_v51  ;;  %v101_v54 = vmul.f32 %v99_v47, %v91_v51 }
  0x59   :  { %v108_v55 = vmul.f32 %v106_v49, %v92_v52  ;;  %v102_v56 = vmul.f32 %v100_v50, %v92_v52 }
  0x5a   :  { %v109_v57 = vmul.f32 %v107_v53, %v69_v11  ;;  %v103_v58 = vmul.f32 %v101_v54, %v73_v13 }
  0x5b   :  { %v110_v59 = vmul.f32 %v108_v55, %v70_v12  ;;  %v104_v60 = vmul.f32 %v102_v56, %v74_v14 }
  0x5d   :  { %v112_v61 = vadd.f32 %v110_v59, %v109_v57  ;;  %v117_v62 = vadd.f32 %v104_v60, %v103_v58 }
  0x5f   :  { %114 = vst [vmem:[#allocation7] sm:$0xff] %v112_v61  ;;  %119 = vst [vmem:[#allocation7 + $0x8] sm:$0xff] %v117_v62 }
  0x60   :  { %225 = shalt.err (!%p222_p6)
}
  0x61   :  { %s226_s15 = scalar_lea.hbm %s318_s3, 512 }
  0x62   :  { %p227_p7 = scmp.ne.s32.totalorder %s318_s3, %s226_s15  ;;  %p230_p8 = scmp.lt.u32.totalorder %s226_s15, %s318_s3 }
  0x64   :  { %p232_p9 = pnand %p230_p8, %p227_p7 }
  0x66   :  { %235 = shalt.err (!%p232_p9)
}
  0x67   :  { %141 = dma.vmem_to_hbm [thread:$0]  %s136_s2, 512, %s318_s3, [#allocation4], %s243_s22, %s243_s22, %s244_s23  }
  0x68   :  { %240 = dma.done.wait [#allocation4], 512  }
  0x69   :  { %241 = vsyncadd [#allocation4], 4294966784 }
  0x6a   :  { %145 = vsyncpa [#allocation3], 1 }
  0x6b   :  { %146 = vsyncpa [#allocation6], 1 }
  0x6c   :  { %147 = vsyncpa [#allocation4], 1 }

</bundles_post_ra>
